<compile_context>
chip_gen: v5e
topology: v5e:2x2
jax: 0.10.0
libtpu: 0.0.40
codegen_flags: <defaults>
</compile_context>

<pallas_src>
import jax
import jax.numpy as jnp
from jax import lax
from jax.experimental import pallas as pl
from jax.experimental.pallas import tpu as pltpu

EPS = 1e-5
_MIB = 1024 * 1024

# If the per-batch (C, HW) style block exceeds this many elements, use the HW-tiled
# two-phase pool so the block + f32 temporaries stay bounded on v7x (64 MiB VMEM).
_POOL_SINGLE_BLOCK_MAX_ELEMS = 1_500_000


# --------------------------------------------------------------------------------------
# small helpers
# --------------------------------------------------------------------------------------
def _divisors(n):
    ds = set()
    i = 1
    while i * i <= n:
        if n % i == 0:
            ds.add(i)
            ds.add(n // i)
        i += 1
    return sorted(ds)


def _sublane_multiple(itemsize):
    # native sublane packing: f32 -> 8, bf16 -> 16, int8/fp8 -> 32
    return max(8, 32 // max(int(itemsize), 1))


def _pick_row_tile(total_rows, row_bytes, sublane, target_bytes=2 * _MIB):
    """Largest T dividing total_rows, sublane-aligned, with T*row_bytes ~<= target."""
    max_t = max(1, target_bytes // max(row_bytes, 1))
    divs = _divisors(total_rows)
    preds = (
        lambda t: t % sublane == 0 and t <= max_t and total_rows // t >= 2,
        lambda t: t % sublane == 0 and t <= max_t,
        lambda t: t % 8 == 0 and t <= max_t,
        lambda t: t % sublane == 0,
        lambda t: t % 8 == 0,
    )
    for pred in preds:
        cands = [t for t in divs if pred(t)]
        if cands:
            return max(cands)
    return total_rows  # full-extent block is always layout-legal


def _pick_lane_tile(hw, c, itemsize, target_bytes=2 * _MIB):
    """HW tile for the tiled pool: multiple of 128 dividing hw, block ~target bytes."""
    max_t = max(128, target_bytes // max(c * itemsize, 1))
    divs = [t for t in _divisors(hw) if t % 128 == 0]
    if not divs:
        return None
    cands = [t for t in divs if t <= max_t and hw // t >= 2]
    if cands:
        return max(cands)
    cands = [t for t in divs if t <= max_t]
    if cands:
        return max(cands)
    return min(divs)


def _vmem_cap():
    cap = 64 * _MIB  # safe default (v7x physical); query the real capacity if possible
    try:
        cap = int(pltpu.get_tpu_info().vmem_capacity_bytes)
    except Exception:
        pass
    return max(16 * _MIB, int(0.75 * cap))  # leave headroom for compiler scratch


def _vmem_limit(nbytes, cap):
    return int(min(max(int(nbytes), 16 * _MIB), cap))


# --------------------------------------------------------------------------------------
# spatial-pool kernels
# --------------------------------------------------------------------------------------
def _pool_single_kernel(style_ref, wmask_ref, bmask_ref, ctx_ref):
    # One batch element, full (C, HW) block.  Algebraic rewrite: fold rsqrt(var) into
    # the conv_mask weight; never materialize the normalized style.
    s = style_ref[...].astype(jnp.float32)                         # (C, HW)
    hw = s.shape[1]
    ssum = jnp.sum(s, axis=1, keepdims=True)                       # (C, 1)
    sqsum = jnp.sum(s * s, axis=1, keepdims=True)                  # (C, 1)
    mean = ssum * (1.0 / hw)
    var = (sqsum - mean * ssum) * (1.0 / max(hw - 1, 1))           # torch unbiased var
    inv_std = lax.rsqrt(var + EPS)                                 # EUP slot
    wp = wmask_ref[...].astype(jnp.float32) * inv_std              # folded 1x1 conv weight
    bp = bmask_ref[...].astype(jnp.float32) - jnp.sum(wp * mean, axis=0, keepdims=True)
    logits = jnp.sum(wp * s, axis=0, keepdims=True) + bp           # (1, HW) == conv_mask(F_s)
    m = jnp.max(logits, axis=1, keepdims=True)
    e = jnp.exp(logits - m)
    mask = e / jnp.sum(e, axis=1, keepdims=True)                   # exact softmax over spatial
    ctx_ref[...] = jnp.sum(s * mask, axis=1, keepdims=True)        # weighted sum of raw Fs


def _make_pool_stats_kernel(hw_total):
    inv_n = 1.0 / hw_total
    inv_nm1 = 1.0 / max(hw_total - 1, 1)

    def kernel(style_ref, wmask_ref, bmask_ref, wp_ref, bp_ref, sum_sc, sq_sc):
        t = pl.program_id(1)

        @pl.when(t == 0)
        def _():
            sum_sc[...] = jnp.zeros_like(sum_sc)
            sq_sc[...] = jnp.zeros_like(sq_sc)

        s = style_ref[...].astype(jnp.float32)                     # (C, Thw)
        sum_sc[...] += jnp.sum(s, axis=1, keepdims=True)
        sq_sc[...] += jnp.sum(s * s, axis=1, keepdims=True)

        @pl.when(t == pl.num_programs(1) - 1)
        def _():
            mean = sum_sc[...] * inv_n
            var = (sq_sc[...] - mean * sum_sc[...]) * inv_nm1
            inv_std = lax.rsqrt(var + EPS)
            wp = wmask_ref[...].astype(jnp.float32) * inv_std
            wp_ref[...] = wp
            bp_ref[...] = (bmask_ref[...].astype(jnp.float32)
                           - jnp.sum(wp * mean, axis=0, keepdims=True))

    return kernel


def _pool_ctx_kernel(style_ref, wp_ref, bp_ref, ctx_ref, m_sc, l_sc, acc_sc):
    # Online softmax over HW tiles + running weighted sum (flash-style accumulators).
    t = pl.program_id(1)

    @pl.when(t == 0)
    def _():
        m_sc[...] = jnp.full_like(m_sc, -jnp.inf)
        l_sc[...] = jnp.zeros_like(l_sc)
        acc_sc[...] = jnp.zeros_like(acc_sc)

    s = style_ref[...].astype(jnp.float32)                                    # (C, Thw)
    logits = jnp.sum(wp_ref[...] * s, axis=0, keepdims=True) + bp_ref[...]    # (1, Thw)
    m_new = jnp.maximum(m_sc[...], jnp.max(logits, axis=1, keepdims=True))
    alpha = jnp.exp(m_sc[...] - m_new)
    p = jnp.exp(logits - m_new)
    l_sc[...] = alpha * l_sc[...] + jnp.sum(p, axis=1, keepdims=True)
    acc_sc[...] = alpha * acc_sc[...] + jnp.sum(s * p, axis=1, keepdims=True)
    m_sc[...] = m_new

    @pl.when(t == pl.num_programs(1) - 1)
    def _():
        ctx_ref[...] = acc_sc[...] / l_sc[...]


def _spatial_pool(style3, wmask, bmask, *, force_tiled=False):
    B, C, HW = style3.shape
    itemsize = style3.dtype.itemsize
    cap = _vmem_cap()

    thw = _pick_lane_tile(HW, C, itemsize)
    use_tiled = ((force_tiled or C * HW > _POOL_SINGLE_BLOCK_MAX_ELEMS)
                 and thw is not None and thw < HW)
    # TODO(synk): if C*HW is huge but HW has no multiple-of-128 divisor (< HW), we still
    # fall back to the single-block pool; a masked/cdiv tiling would cover that corner.

    if not use_tiled:
        est = 2 * C * HW * itemsize + 4 * C * HW * 4 + 2 * _MIB
        return pl.pallas_call(
            _pool_single_kernel,
            out_shape=jax.ShapeDtypeStruct((B, C, 1), jnp.float32),
            grid_spec=pltpu.PrefetchScalarGridSpec(
                num_scalar_prefetch=0,
                grid=(B,),
                in_specs=[
                    pl.BlockSpec((None, C, HW), lambda b: (b, 0, 0)),
                    pl.BlockSpec((C, 1), lambda b: (0, 0)),
                    pl.BlockSpec((1, 1), lambda b: (0, 0)),
                ],
                out_specs=pl.BlockSpec((None, C, 1), lambda b: (b, 0, 0)),
            ),
            compiler_params=pltpu.CompilerParams(
                dimension_semantics=("parallel",),
                vmem_limit_bytes=_vmem_limit(est, cap),
            ),
        )(style3, wmask, bmask)

    # two-phase HW-tiled pool (bounded VMEM; needed for large C*HW on v7x)
    n_hw = HW // thw
    est = 2 * C * thw * itemsize + 4 * C * thw * 4 + 2 * _MIB
    params = pltpu.CompilerParams(
        dimension_semantics=("parallel", "arbitrary"),
        vmem_limit_bytes=_vmem_limit(est, cap),
    )

    wp, bp = pl.pallas_call(
        _make_pool_stats_kernel(HW),
        out_shape=(jax.ShapeDtypeStruct((B, C, 1), jnp.float32),
                   jax.ShapeDtypeStruct((B, 1, 1), jnp.float32)),
        grid_spec=pltpu.PrefetchScalarGridSpec(
            num_scalar_prefetch=0,
            grid=(B, n_hw),
            in_specs=[
                pl.BlockSpec((None, C, thw), lambda b, t: (b, 0, t)),
                pl.BlockSpec((C, 1), lambda b, t: (0, 0)),
                pl.BlockSpec((1, 1), lambda b, t: (0, 0)),
            ],
            out_specs=(pl.BlockSpec((None, C, 1), lambda b, t: (b, 0, 0)),
                       pl.BlockSpec((None, 1, 1), lambda b, t: (b, 0, 0))),
            scratch_shapes=[pltpu.VMEM((C, 1), jnp.float32),
                            pltpu.VMEM((C, 1), jnp.float32)],
        ),
        compiler_params=params,
    )(style3, wmask, bmask)

    ctx = pl.pallas_call(
        _pool_ctx_kernel,
        out_shape=jax.ShapeDtypeStruct((B, C, 1), jnp.float32),
        grid_spec=pltpu.PrefetchScalarGridSpec(
            num_scalar_prefetch=0,
            grid=(B, n_hw),
            in_specs=[
                pl.BlockSpec((None, C, thw), lambda b, t: (b, 0, t)),
                pl.BlockSpec((None, C, 1), lambda b, t: (b, 0, 0)),
                pl.BlockSpec((None, 1, 1), lambda b, t: (b, 0, 0)),
            ],
            out_specs=pl.BlockSpec((None, C, 1), lambda b, t: (b, 0, 0)),
            scratch_shapes=[pltpu.VMEM((1, 1), jnp.float32),
                            pltpu.VMEM((1, 1), jnp.float32),
                            pltpu.VMEM((C, 1), jnp.float32)],
        ),
        compiler_params=params,
    )(style3, wp, bp)
    return ctx


# --------------------------------------------------------------------------------------
# external-attention kernels
# --------------------------------------------------------------------------------------
def _ea_fused_kernel(x_ref, add_ref, wmk_ref, csum_ref, wmv_ref, out_ref):
    # channel_add folded into the first matmul as a rank-1 update:
    #   (x + add * 1_C) @ Wk == x @ Wk + add * colsum(Wk)
    x = x_ref[...]
    attn = jnp.dot(x, wmk_ref[...], preferred_element_type=jnp.float32)        # (T, 64)
    attn = attn + add_ref[...].astype(jnp.float32) * csum_ref[...]
    m = jnp.max(attn, axis=1, keepdims=True)
    e = jnp.exp(attn - m)
    # softmax(dim=2) + torch's redundant /sum renorm == one exact normalization
    p = e / jnp.sum(e, axis=1, keepdims=True)
    out = jnp.dot(p, wmv_ref[...], preferred_element_type=jnp.float32)
    out_ref[...] = out.astype(out_ref.dtype)


def _ea_plain_kernel(x_ref, wmk_ref, wmv_ref, out_ref):
    attn = jnp.dot(x_ref[...], wmk_ref[...], preferred_element_type=jnp.float32)
    m = jnp.max(attn, axis=1, keepdims=True)
    e = jnp.exp(attn - m)
    p = e / jnp.sum(e, axis=1, keepdims=True)
    out = jnp.dot(p, wmv_ref[...], preferred_element_type=jnp.float32)
    out_ref[...] = out.astype(out_ref.dtype)


# --------------------------------------------------------------------------------------
# wrapper
# --------------------------------------------------------------------------------------
def gcea_block(content, style, wmask, bmask, wmk, wmv, *, force_tiled_pool=False):
    B, C, H, W = content.shape
    HW = H * W
    cap = _vmem_cap()

    # ---- spatial attention pooling -> ctx[b, c, 0] (f32, tiny) -------------------------
    ctx = _spatial_pool(style.reshape(B, C, HW), wmask, bmask, force_tiled=force_tiled_pool)

    # ---- external attention with channel_add fused --------------------------------------
    # torch: z = content + ctx (broadcast over HW), then z.view(b, h*w, c) -- a RAW
    # row-major reinterpretation, NOT a transpose.  content.reshape(B*HW, C) is that raw
    # view with B folded into the row axis (pipeline depth / megacore even at B == 1).
    out_dtype = content.dtype
    rows = B * HW
    itemsize = content.dtype.itemsize
    sublane = _sublane_multiple(itemsize)
    kdim = wmk.shape[1]

    fused = (HW % C == 0)
    if fused:
        x2 = content.reshape(rows, C)                               # raw view, native dtype
        # per raw-view-row additive context (row-constant because HW % C == 0)
        add_col = jnp.repeat(ctx[:, :, 0], HW // C, axis=1).reshape(rows, 1)
        csum = jnp.sum(wmk.astype(jnp.float32), axis=0, keepdims=True)          # (1, 64)
    else:
        # TODO(synk): when HW % C != 0 a raw-view row straddles channel blocks; fall back
        # to materializing z = content + ctx in HBM (native dtype) and skip the add input.
        z = content.reshape(B, C, HW) + ctx.astype(content.dtype)
        x2 = z.reshape(rows, C)

    T = _pick_row_tile(rows, C * (itemsize + out_dtype.itemsize), sublane)
    n_t = rows // T

    ea_est = (2 * T * C * (itemsize + out_dtype.itemsize)           # x + out double-buffered
              + 2 * T * 4                                           # add column
              + 2 * (C * kdim + kdim * C + kdim) * 4                # weights (double-buffered)
              + T * (3 * kdim + 3 * C) * 4                          # f32 temporaries headroom
              + 4 * _MIB)
    ea_params = pltpu.CompilerParams(
        dimension_semantics=("parallel",),
        vmem_limit_bytes=_vmem_limit(ea_est, cap),
    )
    out_shape = jax.ShapeDtypeStruct((rows, C), out_dtype)

    if fused:
        out2 = pl.pallas_call(
            _ea_fused_kernel,
            out_shape=out_shape,
            grid_spec=pltpu.PrefetchScalarGridSpec(
                num_scalar_prefetch=0,
                grid=(n_t,),
                in_specs=[
                    pl.BlockSpec((T, C), lambda t: (t, 0)),
                    pl.BlockSpec((T, 1), lambda t: (t, 0)),
                    # TODO(synk): wmk/wmv are grid-invariant; pipeline_mode=pl.Buffered(1)
                    # would save one weight buffer on v7x, skipped here for lowering safety.
                    pl.BlockSpec((C, kdim), lambda t: (0, 0)),
                    pl.BlockSpec((1, kdim), lambda t: (0, 0)),
                    pl.BlockSpec((kdim, C), lambda t: (0, 0)),
                ],
                out_specs=pl.BlockSpec((T, C), lambda t: (t, 0)),
            ),
            compiler_params=ea_params,
        )(x2, add_col, wmk, csum, wmv)
    else:
        out2 = pl.pallas_call(
            _ea_plain_kernel,
            out_shape=out_shape,
            grid_spec=pltpu.PrefetchScalarGridSpec(
                num_scalar_prefetch=0,
                grid=(n_t,),
                in_specs=[
                    pl.BlockSpec((T, C), lambda t: (t, 0)),
                    pl.BlockSpec((C, kdim), lambda t: (0, 0)),
                    pl.BlockSpec((kdim, C), lambda t: (0, 0)),
                ],
                out_specs=pl.BlockSpec((T, C), lambda t: (t, 0)),
            ),
            compiler_params=ea_params,
        )(x2, wmk, wmv)

    # raw view back to NCHW (torch out.view(b, c, h, w))
    return out2.reshape(B, C, H, W)


# --------------------------------------------------------------------------------------
# pure-JAX reference mirroring the PyTorch forward exactly (f32)
# --------------------------------------------------------------------------------------
def _reference(content, style, wmask, bmask, wmk, wmv):
    B, C, H, W = content.shape
    HW = H * W
    c32 = content.astype(jnp.float32)
    s = style.astype(jnp.float32).reshape(B, C, HW)
    mean = jnp.mean(s, axis=2, keepdims=True)
    var = jnp.sum((s - mean) ** 2, axis=2, keepdims=True) / max(HW - 1, 1)
    fs = (s - mean) / jnp.sqrt(var + EPS)
    logits = jnp.einsum("bcs,c->bs", fs, wmask[:, 0]) + bmask[0, 0]
    mask = jax.nn.softmax(logits, axis=1)
    ctx = jnp.einsum("bcs,bs->bc", s, mask)[..., None]              # (B, C, 1)
    z = c32.reshape(B, C, HW) + ctx
    z2 = z.reshape(B, HW, C)                                        # raw view, NOT transpose
    attn = z2 @ wmk
    attn = jax.nn.softmax(attn, axis=2)
    attn = attn / jnp.sum(attn, axis=2, keepdims=True)
    out = attn @ wmv
    return out.reshape(B, C, H, W)


if __name__ == "__main__":
    # small shapes consistent with the module: inplanes = C, mk: C->64, mv: 64->C
    B, C, H, W = 2, 4, 16, 16
    key = jax.random.PRNGKey(0)
    k1, k2, k3, k4, k5, k6, k7, k8 = jax.random.split(key, 8)

    content = jax.random.normal(k1, (B, C, H, W), dtype=jnp.float32)
    style = jax.random.normal(k2, (B, C, H, W), dtype=jnp.float32)

    wmask = 0.2 * jax.random.normal(k3, (C, 1), dtype=jnp.float32)   # conv_mask.weight (1,C,1,1)
    bmask = 0.1 * jax.random.normal(k4, (1, 1), dtype=jnp.float32)   # conv_mask.bias
    wmk = 0.1 * jax.random.normal(k5, (C, 64), dtype=jnp.float32)    # mk.weight.T (Linear C->64)
    wmv = 0.1 * jax.random.normal(k6, (64, C), dtype=jnp.float32)    # mv.weight.T (Linear 64->C)
    # note: channel_add_conv params exist in the torch module but are never used in forward.

    ref = _reference(content, style, wmask, bmask, wmk, wmv)

    # 1) fused channel_add path (HW % C == 0), single-block pool, f32
    out = jax.block_until_ready(gcea_block(content, style, wmask, bmask, wmk, wmv))
    assert out.shape == (B, C, H, W)
    assert jnp.allclose(out, ref, atol=2e-3, rtol=2e-3), float(jnp.max(jnp.abs(out - ref)))

    # 2) two-phase HW-tiled pool path (used for v7x-sized blocks), forced here for coverage
    out_t = jax.block_until_ready(
        gcea_block(content, style, wmask, bmask, wmk, wmv, force_tiled_pool=True))
    assert jnp.allclose(out_t, ref, atol=2e-3, rtol=2e-3), float(jnp.max(jnp.abs(out_t - ref)))

    # 3) EA fallback path (HW % C != 0): no zero "add" input is streamed
    content5 = jax.random.normal(k7, (B, C, 5, 5), dtype=jnp.float32)
    style5 = jax.random.normal(k8, (B, C, 5, 5), dtype=jnp.float32)
    ref5 = _reference(content5, style5, wmask, bmask, wmk, wmv)
    out5 = jax.block_until_ready(gcea_block(content5, style5, wmask, bmask, wmk, wmv))
    assert jnp.allclose(out5, ref5, atol=2e-3, rtol=2e-3), float(jnp.max(jnp.abs(out5 - ref5)))

    # 4) bf16 inputs flow through natively (no wrapper pre-cast); output stays bf16
    out_bf = jax.block_until_ready(
        gcea_block(content.astype(jnp.bfloat16), style.astype(jnp.bfloat16),
                   wmask, bmask, wmk, wmv))
    assert out_bf.dtype == jnp.bfloat16
    assert jnp.allclose(out_bf.astype(jnp.float32), ref, atol=6e-2, rtol=6e-2), \
        float(jnp.max(jnp.abs(out_bf.astype(jnp.float32) - ref)))

    print("KERNEL_OK")
</pallas_src>

<mosaic_0001>
module attributes {stable_mosaic.version = 11 : i64} {
  func.func @_pool_single_kernel(%arg0: i32, %arg1: memref<1x4x256xf32, #tpu.memory_space<vmem>>, %arg2: memref<4x1xf32, #tpu.memory_space<vmem>>, %arg3: memref<1x1xf32, #tpu.memory_space<vmem>>, %arg4: memref<1x4x1xf32, #tpu.memory_space<vmem>>) attributes {dimension_semantics = [#tpu.dimension_semantics<parallel>], iteration_bounds = array<i64: 2>, scalar_prefetch = 0 : i64, scratch_operands = 0 : i64, tpu.core_type = #tpu.core_type<tc>, window_params = [{transform_indices = @transform_0, window_bounds = array<i64: 1, 4, 256>}, {pipeline_mode = #tpu.pipeline_mode<synchronous>, transform_indices = @transform_1, window_bounds = array<i64: 4, 1>}, {pipeline_mode = #tpu.pipeline_mode<synchronous>, transform_indices = @transform_2, window_bounds = array<i64: 1, 1>}, {transform_indices = @transform_3, window_bounds = array<i64: 1, 4, 1>}]} {
    %c0 = arith.constant 0 : index
    %c0_0 = arith.constant 0 : index
    %c0_1 = arith.constant 0 : index
    %0 = vector.load %arg1[%c0, %c0_0, %c0_1] : memref<1x4x256xf32, #tpu.memory_space<vmem>>, vector<1x4x256xf32>
    %1 = vector.shape_cast %0 : vector<1x4x256xf32> to vector<4x256xf32>
    %cst = arith.constant dense<0.000000e+00> : vector<4xf32>
    %2 = vector.multi_reduction <add>, %1, %cst [1] : vector<4x256xf32> to vector<4xf32>
    %3 = vector.shape_cast %2 : vector<4xf32> to vector<4x1xf32>
    %4 = arith.mulf %1, %1 : vector<4x256xf32>
    %cst_2 = arith.constant dense<0.000000e+00> : vector<4xf32>
    %5 = vector.multi_reduction <add>, %4, %cst_2 [1] : vector<4x256xf32> to vector<4xf32>
    %6 = vector.shape_cast %5 : vector<4xf32> to vector<4x1xf32>
    %cst_3 = arith.constant 3.906250e-03 : f32
    %7 = vector.broadcast %cst_3 : f32 to vector<4x1xf32>
    %8 = arith.mulf %3, %7 : vector<4x1xf32>
    %9 = arith.mulf %8, %3 : vector<4x1xf32>
    %10 = arith.subf %6, %9 : vector<4x1xf32>
    %cst_4 = arith.constant 0.00392156886 : f32
    %11 = vector.broadcast %cst_4 : f32 to vector<4x1xf32>
    %12 = arith.mulf %10, %11 : vector<4x1xf32>
    %cst_5 = arith.constant 9.99999974E-6 : f32
    %13 = vector.broadcast %cst_5 : f32 to vector<4x1xf32>
    %14 = arith.addf %12, %13 : vector<4x1xf32>
    %15 = math.rsqrt %14 : vector<4x1xf32>
    %c0_6 = arith.constant 0 : index
    %c0_7 = arith.constant 0 : index
    %16 = vector.load %arg2[%c0_6, %c0_7] : memref<4x1xf32, #tpu.memory_space<vmem>>, vector<4x1xf32>
    %17 = arith.mulf %16, %15 : vector<4x1xf32>
    %c0_8 = arith.constant 0 : index
    %c0_9 = arith.constant 0 : index
    %18 = vector.load %arg3[%c0_8, %c0_9] : memref<1x1xf32, #tpu.memory_space<vmem>>, vector<1x1xf32>
    %19 = arith.mulf %17, %8 : vector<4x1xf32>
    %cst_10 = arith.constant dense<0.000000e+00> : vector<1xf32>
    %20 = vector.multi_reduction <add>, %19, %cst_10 [0] : vector<4x1xf32> to vector<1xf32>
    %21 = vector.shape_cast %20 : vector<1xf32> to vector<1x1xf32>
    %22 = arith.subf %18, %21 : vector<1x1xf32>
    %23 = vector.broadcast %17 : vector<4x1xf32> to vector<4x256xf32>
    %24 = arith.mulf %23, %1 : vector<4x256xf32>
    %cst_11 = arith.constant dense<0.000000e+00> : vector<256xf32>
    %25 = vector.multi_reduction <add>, %24, %cst_11 [0] : vector<4x256xf32> to vector<256xf32>
    %26 = vector.shape_cast %25 : vector<256xf32> to vector<1x256xf32>
    %27 = vector.broadcast %22 : vector<1x1xf32> to vector<1x256xf32>
    %28 = arith.addf %26, %27 : vector<1x256xf32>
    %cst_12 = arith.constant dense<0xFF800000> : vector<1xf32>
    %29 = vector.multi_reduction <maximumf>, %28, %cst_12 [1] : vector<1x256xf32> to vector<1xf32>
    %30 = vector.shape_cast %29 : vector<1xf32> to vector<1x1xf32>
    %31 = vector.broadcast %30 : vector<1x1xf32> to vector<1x256xf32>
    %32 = arith.subf %28, %31 : vector<1x256xf32>
    %33 = math.exp %32 : vector<1x256xf32>
    %cst_13 = arith.constant dense<0.000000e+00> : vector<1xf32>
    %34 = vector.multi_reduction <add>, %33, %cst_13 [1] : vector<1x256xf32> to vector<1xf32>
    %35 = vector.shape_cast %34 : vector<1xf32> to vector<1x1xf32>
    %36 = vector.broadcast %35 : vector<1x1xf32> to vector<1x256xf32>
    %37 = arith.divf %33, %36 : vector<1x256xf32>
    %38 = vector.broadcast %37 : vector<1x256xf32> to vector<4x256xf32>
    %39 = arith.mulf %1, %38 : vector<4x256xf32>
    %cst_14 = arith.constant dense<0.000000e+00> : vector<4xf32>
    %40 = vector.multi_reduction <add>, %39, %cst_14 [1] : vector<4x256xf32> to vector<4xf32>
    %41 = vector.shape_cast %40 : vector<4xf32> to vector<4x1xf32>
    %c0_15 = arith.constant 0 : index
    %c0_16 = arith.constant 0 : index
    %c0_17 = arith.constant 0 : index
    %42 = vector.load %arg4[%c0_15, %c0_16, %c0_17] : memref<1x4x1xf32, #tpu.memory_space<vmem>>, vector<1x4x1xf32>
    %43 = vector.shape_cast %42 : vector<1x4x1xf32> to vector<4x1xf32>
    %44 = vector.shape_cast %41 : vector<4x1xf32> to vector<1x4x1xf32>
    tpu.vector_store %arg4[%c0_15, %c0_16, %c0_17], %44 {strides = array<i32>} : memref<1x4x1xf32, #tpu.memory_space<vmem>>, vector<1x4x1xf32>,
    return
  }
  func.func @transform_0(%arg0: i32) -> (i32, i32, i32) {
    %c0_i32 = arith.constant 0 : i32
    %c0_i32_0 = arith.constant 0 : i32
    %c0_i32_1 = arith.constant 0 : i32
    return %arg0, %c0_i32, %c0_i32_0 : i32, i32, i32
  }
  func.func @transform_1(%arg0: i32) -> (i32, i32) {
    %c0_i32 = arith.constant 0 : i32
    %c0_i32_0 = arith.constant 0 : i32
    %c0_i32_1 = arith.constant 0 : i32
    return %c0_i32, %c0_i32_0 : i32, i32
  }
  func.func @transform_2(%arg0: i32) -> (i32, i32) {
    %c0_i32 = arith.constant 0 : i32
    %c0_i32_0 = arith.constant 0 : i32
    %c0_i32_1 = arith.constant 0 : i32
    return %c0_i32, %c0_i32_0 : i32, i32
  }
  func.func @transform_3(%arg0: i32) -> (i32, i32, i32) {
    %c0_i32 = arith.constant 0 : i32
    %c0_i32_0 = arith.constant 0 : i32
    %c0_i32_1 = arith.constant 0 : i32
    return %arg0, %c0_i32, %c0_i32_0 : i32, i32, i32
  }
}

</mosaic_0001>

<bundles_post_ra>
// kernel: tpu_custom_call.1
= control target key start
LH: loop header
LB: loop body
LE: loop exit
PB: predicated region body
PF: predicated region fallthrough
CT: control target
= control target key end

     0   :  { %s656_s0 = inlined_call_operand.hbm [shape: f32[2,4,256], index: 0, kind: input, shape index: {}]   ;;  %s657_s1 = inlined_call_operand.vmem [shape: f32[4,1], index: 1, kind: input, shape index: {}]   ;;  %s658_s2 = inlined_call_operand.<no memory space> [shape: f32[1,1], index: 2, kind: input, shape index: {}]   ;;  %s659_s3 = inlined_call_operand.vmem [shape: f32[2,4,1], index: 3, kind: output, shape index: {}]  }
   0x1   :  { %v8_v0 = vstv %s658_s2 }
   0x2   :  { %9 = vst [vmem:[#allocation2] sm:$0x1] %v8_v0 }
   0x3   :  { %10 = vsyncpa [#allocation4], 0 }
   0x4   :  { %12 = vsyncpa [#allocation4 + $0x1], 0  ;;  %s541_s14 = smov 0   ;;  %s543_s15 = smov 0  }
   0x5   :  { %s545_s16 = smov 0   ;;  %s547_s17 = smov 0  }
   0x6 LB: > { %s560_s2 = sadd.s32 4294967295, %s515_s17   ;;  %s563_s18 = sadd.s32 1, %s515_s17   ;;  %s515_s17 = sphi %s547_s17, %s666_s17   ;;  %s511_s16 = sphi %s545_s16, %s665_s16   ;;  %s507_s15 = sphi %s543_s15, %s664_s15   ;;  %s503_s14 = sphi %s541_s14, %s663_s14  }
   0x7   : > { %s22_s19 = ssub.s32 %s515_s17, %s563_s18  ;;  %s25_s20 = sadd.s32 1, %s511_s16 }
   0x8   : > { %p23_p0 = scmp.eq.s32.totalorder %s22_s19, 0  ;;  %p32_p1 = scmp.ne.s32.totalorder %s511_s16, %s507_s15 }
   0x9   : > { %p33_p2 = scmp.eq.s32.totalorder %s515_s17, 0  ;;  %p38_p3 = scmp.ne.s32.totalorder %s507_s15, %s503_s14 }
   0xa   : > { %s573_s21 = scalar_select %p23_p0, %s511_s16, %s25_s20  }
   0xb   : > { %p575_p4 = por %p33_p2, %p32_p1  ;;  %p39_p5 = scmp.eq.s32.totalorder %s560_s2, 0 }
   0xc   : > { %p407_p6 = scmp.lt.s32.totalorder %s515_s17, 2  ;;  %s136_s24 = sand.u32 1, %s511_s16  }
   0xd   : > { %p581_p7 = por %p39_p5, %p38_p3  ;;  %s392_s25 = sshll.u32 %s136_s24, 3 }
   0xe   : > { %s400_s26 = sshll.u32 %s515_s17, 3  ;;  %s140_s30 = scalar_lea.vmem [#allocation3], %s392_s25 }
   0xf   : > { %s145_s29 = scalar_lea.hbm %s656_s0, %s400_s26  ;;  %s149_s4 = sshll.u32 %s140_s30, 4  ;;  %s150_s4 = int_to_ptr.vmem [resolvable:$true] %s149_s4 }
  0x10   : > { %s147_s5 = sshll.u32 %s145_s29, 4  ;;  %p592_p8 = pnand %p407_p6, %p575_p4  ;;  %s148_s5 = int_to_ptr.hbm [resolvable:$true] %s147_s5 }
  0x11   : > { %p395_p9 = scmp.ge.s32.totalorder %s515_s17, 1  ;;  %p154_p10 = scmp.lt.s32.totalorder %s515_s17, 3 }
  0x12   : > { %s137_s7 = scalar_lea.sflag [#allocation4], %s136_s24  ;;  %s451_s8 = sshra.s32 %s148_s5, 4  ;;  %s452_s8 = int_to_ptr.hbm [resolvable:$true] %s451_s8 }
  0x13   : > { %s453_s9 = scalar_lea.hbm %s452_s8, 8  ;;  %p455_p12 = pneg %p592_p8 }
  0x14   : > { %p454_p11 = scmp.ne.s32.totalorder %s452_s8, %s453_s9  ;;  %s458_s12 = scalar_lea.hbm %s656_s0, 16 }
  0x15   : > { %p459_p1 = scmp.lt.s32.totalorder %s452_s8, %s656_s0  ;;  %p460_p2 = scmp.lt.s32.totalorder %s458_s12, %s453_s9 }
  0x16   : > { %p456_p13 = pnand %p455_p12, %p454_p11 }
  0x17   : > { %p461_p3 = por %p460_p2, %p459_p1 }
  0x18   : > { %p457_p0 = pneg %p456_p13 }
  0x1a   : > { %p462_p4 = pnand %p461_p3, %p457_p0 }
  0x1c   : > { %465 = shalt.err (!%p462_p4)
}
  0x1d   : > { %406 = dma.hbm_to_vmem [thread:$0]  (!%p592_p8), %s148_s5, 128, %s150_s4, %s137_s7  }
  0x1e   : > { %p155_p5 = pnand %p395_p9, %p154_p10 }
  0x1f   : > { %s160_s19 = sand.u32 (!%p155_p5), 1, %s507_s15  }
  0x20   : > { %158 = sbr.rel (%p155_p5) target bundleno = 736 (0x2e0), region = 32  ;;  %s396_s20 = sshll.u32 (!%p155_p5), %s160_s19, 3 }
  0x21   : > { %s161_s22 = scalar_lea.sflag (!%p155_p5), [#allocation4], %s160_s19  ;;  %s164_s24 = scalar_lea.vmem (!%p155_p5), [#allocation3], %s396_s20 }
  0x25   : > { %498 = dma.done.wait (%p581_p7), %s161_s22, 128  }
  0x26   : > { %500 = vsyncadd (%p581_p7), %s161_s22, 4294967168  ;;  %v617_v1 = vld [vmem:[%s164_s24] sm:$0xff]  ;;  %vm198_vm0 = vcmask 1043456   ;;  %v517_v13 = vmov 0   ;;  %v231_v27 = vld [vmem:[%s657_s1] sm:$0xf] }
  0x27   : > { %193 = vst [vmem:[#allocation1] ss:$2 sm:$0xff] %v617_v1  ;;  %v204_v2 = vmul.f32 %v617_v1, %v617_v1  ;;  %441 = vset.pattern.permute.xlu1 %v517_v13  ;;  %442 = vset.pattern.permute.xlu0 %v517_v13  ;;  %vm235_vm4 = vcmask 3072   ;;  %v233_v37 = vld [vmem:[#allocation2] sm:$0x1]  ;;  %p187_p6 = scmp.lt.s32.totalorder %s560_s2, 1 }
  0x29   : > { %s668_s2 = smov (!%p187_p6, %s560_s2), 1 }
  0x2a   : > { %s397_s25 = sshll.u32 %s668_s2, 2 }
  0x2b   : > { %s190_s28 = scalar_lea.vmem %s659_s3, %s397_s25 }
  0x2e   : > { %v194_v3 = vld.sshfl [vmem:[#allocation1] sm:$0xff pattern:$0x75316420]  ;;  %v195_v4 = vld.sshfl [vmem:[#allocation1 + $0x8] sm:$0xff pattern:$0x75316420] }
  0x2f   : > { %v199_v5 = vsel %vm198_vm0, %v194_v3, 0.0  ;;  %v200_v6 = vsel %vm198_vm0, %v195_v4, 0.0  ;;  %206 = vst [vmem:[#allocation1] ss:$2 sm:$0xff] %v204_v2 }
  0x30   : > { %v201_v7 = vadd.f32 %v200_v6, %v199_v5 }
  0x32   : > { %202 = vadd.xlane.f32.xlu0 %v201_v7 }
  0x36   : > { %v207_v8 = vld.sshfl [vmem:[#allocation1] sm:$0xff pattern:$0x75316420]  ;;  %v208_v9 = vld.sshfl [vmem:[#allocation1 + $0x8] sm:$0xff pattern:$0x75316420] }
  0x37   : > { %v211_v10 = vsel %vm198_vm0, %v207_v8, 0.0  ;;  %v212_v11 = vsel %vm198_vm0, %v208_v9, 0.0  ;;  %249 = vst [vmem:[#allocation1] ss:$2 sm:$0xff] %v617_v1 }
  0x38   : > { %v213_v12 = vadd.f32 %v212_v11, %v211_v10 }
  0x3a   : > { %214 = vadd.xlane.f32.xlu0 %v213_v12 }
  0x3e   : > { %v250_v40 = vld.sshfl [vmem:[#allocation1] sm:$0xff pattern:$0x75316420]  ;;  %v251_v41 = vld.sshfl [vmem:[#allocation1 + $0x8] sm:$0xff pattern:$0x75316420] }
  0xa5   : > { %v203_v14 = vpop.xlane.xlu0 %202 }
  0xa6   : > { %v216_v15 = vmul.f32 0.00390625, %v203_v14 }
  0xa8   : > { %v217_v16 = vmul.f32 %v216_v15, %v203_v14 }
  0xad   : > { %v215_v17 = vpop.xlane.xlu0 %214 }
  0xae   : > { %v218_v18 = vsub.f32 %v215_v17, %v217_v16 }
  0xb0   : > { %v219_v19 = vmul.f32 0.003921569, %v218_v18 }
  0xb2   : > { %v220_v20 = vadd.f32 1e-05, %v219_v19 }
  0xb4   : > { %443 = vrsqrt.f32 %v220_v20  ;;  %vm227_vm2 = vweird.f32 %v220_v20 }
  0xba   : > { %v444_v21 = vpop.eup %443 }
  0xbb   : > { %v222_v22 = vmul.f32 %v444_v21, %v220_v20  ;;  %vm228_vm1 = vweird.f32 %v444_v21 }
  0xbc   : > { %vm229_vm3 = vmor %vm227_vm2, %vm228_vm1 }
  0xbd   : > { %v223_v23 = vmul.f32 %v444_v21, %v222_v22 }
  0xbf   : > { %v224_v24 = vmul.f32 0.5, %v223_v23 }
  0xc1   : > { %v225_v25 = vsub.f32 1.5, %v224_v24 }
  0xc3   : > { %v226_v26 = vmul.f32 %v444_v21, %v225_v25 }
  0xc5   : > { %v230_v28 = vsel %vm229_vm3, %v444_v21, %v226_v26 }
  0xc6   : > { %v232_v29 = vmul.f32 %v231_v27, %v230_v28 }
  0xc8   : > { %246 = vperm.xlu1 %441, %v232_v29   ;;  %v234_v30 = vmul.f32 %v232_v29, %v216_v15 }
  0xca   : > { %v236_v31 = vsel %vm235_vm4, %v234_v30, 0.0 }
  0xcb   : > { %v237_v32 = vrot.slane %v236_v31, 4 }
  0xcd   : > { %v238_v33 = vadd.f32 %v237_v32, %v236_v31 }
  0xcf   : > { %v239_v34 = vrot.slane %v238_v33, 2 }
  0xd1   : > { %v240_v35 = vadd.f32 %v239_v34, %v238_v33 }
  0xd3   : > { %v241_v36 = vrot.slane %v240_v35, 1 }
  0xd5   : > { %v242_v38 = vadd.f32 %v241_v36, %v240_v35 }
  0xd7   : > { %v243_v39 = vsub.f32 %v233_v37, %v242_v38 }
  0xd9   : > { %272 = vperm.xlu1 %441, %v243_v39  }
 0x13a   : > { %v247_v42 = vpop.permute.xlu1 %246 }
 0x13b   : > { %v254_v43 = vmul.f32 %v250_v40, %v247_v42  ;;  %v255_v44 = vmul.f32 %v251_v41, %v247_v42 }
 0x13d   : > { %v256_v45 = vsel %vm198_vm0, %v254_v43, 0.0  ;;  %v263_v46 = vsel %vm198_vm0, %v255_v44, 0.0 }
 0x13e   : > { %v257_v47 = vrot.slane %v256_v45, 4  ;;  %v264_v48 = vrot.slane %v263_v46, 4 }
 0x140   : > { %v258_v49 = vadd.f32 %v257_v47, %v256_v45  ;;  %v265_v50 = vadd.f32 %v264_v48, %v263_v46 }
 0x142   : > { %v259_v51 = vrot.slane %v258_v49, 2  ;;  %v266_v52 = vrot.slane %v265_v50, 2 }
 0x144   : > { %v260_v53 = vadd.f32 %v259_v51, %v258_v49  ;;  %v267_v54 = vadd.f32 %v266_v52, %v265_v50 }
 0x146   : > { %v261_v55 = vrot.slane %v260_v53, 1  ;;  %v268_v56 = vrot.slane %v267_v54, 1 }
 0x148   : > { %v262_v58 = vadd.f32 %v261_v55, %v260_v53  ;;  %v269_v59 = vadd.f32 %v268_v56, %v267_v54 }
 0x14b   : > { %v273_v57 = vpop.permute.xlu1 %272 }
 0x14c   : > { %v275_v60 = vperm.slane %v273_v57, 0 }
 0x14e   : > { %v276_v61 = vadd.f32 %v275_v60, %v262_v58  ;;  %v277_v62 = vadd.f32 %v275_v60, %v269_v59 }
 0x150   : > { %v278_v63 = vmax.f32 %v276_v61, %v277_v62 }
 0x152   : > { %279 = vmax.xlane.f32.xlu2 %v278_v63 }
 0x1c5   : > { %v280_v0 = vpop.xlane.xlu2 %279 }
 0x1c6   : > { %v281_v2 = vsub.f32 %v276_v61, %v280_v0  ;;  %v282_v3 = vsub.f32 %v277_v62, %v280_v0 }
 0x1c8   : > { %v283_v4 = vmul.f32 1.442695, %v281_v2  ;;  %v285_v5 = vmul.f32 1.442695, %v282_v3 }
 0x1ca   : > { %445 = vpow2.f32 %v283_v4 }
 0x1cb   : > { %447 = vpow2.f32 %v285_v5 }
 0x1d0   : > { %v446_v6 = vpop.eup %445 }
 0x1d1   : > { %v448_v7 = vpop.eup %447 }
 0x1d2   : > { %v287_v8 = vadd.f32 %v448_v7, %v446_v6 }
 0x1d4   : > { %288 = vadd.xlane.f32.xlu2 %v287_v8 }
 0x247   : > { %v289_v9 = vpop.xlane.xlu2 %288 }
 0x248   : > { %449 = vrcp.f32 %v289_v9  ;;  %v301_v13 = vand.u32 2147483648, %v289_v9  ;;  %v299_v15 = vand.u32 2147483647, %v289_v9  ;;  %vm295_vm6 = vweird.f32 %v289_v9 }
 0x24a   : > { %v302_v17 = vor.u32 1.1754944e-38, %v301_v13  ;;  %vm300_vm8 = vcmp.eq.f32.partialorder %v299_v15, 8.507059e+37 }
 0x24e   : > { %v450_v10 = vpop.eup %449 }
 0x24f   : > { %v291_v11 = vmul.f32 %v450_v10, %v289_v9  ;;  %vm296_vm5 = vweird.f32 %v450_v10 }
 0x250   : > { %vm297_vm7 = vmor %vm295_vm6, %vm296_vm5 }
 0x251   : > { %v292_v12 = vsub.f32 1.0, %v291_v11 }
 0x253   : > { %v293_v14 = vmul.f32 %v450_v10, %v292_v12 }
 0x255   : > { %v294_v16 = vadd.f32 %v450_v10, %v293_v14 }
 0x257   : > { %v298_v18 = vsel %vm297_vm7, %v450_v10, %v294_v16 }
 0x258   : > { %v303_v19 = vsel %vm300_vm8, %v302_v17, %v298_v18 }
 0x259   : > { %v305_v20 = vmul.f32 %v448_v7, %v303_v19  ;;  %v304_v21 = vmul.f32 %v446_v6, %v303_v19 }
 0x25b   : > { %v308_v22 = vrot.slane %v305_v20, 4 }
 0x25d   : > { %v309_v23 = vsel %vm198_vm0, %v304_v21, %v308_v22 }
 0x25e   : > { %v311_v24 = vmul.f32 %v309_v23, %v617_v1 }
 0x260   : > { %313 = vst [vmem:[#allocation1] ss:$2 sm:$0xff] %v311_v24 }
 0x267   : > { %v314_v25 = vld.sshfl [vmem:[#allocation1] sm:$0xff pattern:$0x75316420]  ;;  %v315_v26 = vld.sshfl [vmem:[#allocation1 + $0x8] sm:$0xff pattern:$0x75316420] }
 0x268   : > { %v318_v27 = vsel %vm198_vm0, %v314_v25, 0.0  ;;  %v319_v28 = vsel %vm198_vm0, %v315_v26, 0.0 }
 0x269   : > { %v320_v29 = vadd.f32 %v319_v28, %v318_v27 }
 0x26b   : > { %321 = vadd.xlane.f32.xlu0 %v320_v29 }
 0x2de   : > { %v322_v30 = vpop.xlane.xlu0 %321 }
 0x2df   : > { %323 = vst.msk [vmem:[%s190_s28] sm:$0xf] %vm235_vm4, %v322_v30 }
 0x2e0 PF: > { %p15_p7 = scmp.ge.s32.totalorder %s563_s18, 4   ;;  %s663_s14 = smov %s507_s15 }
 0x2e1   : > { %s664_s15 = smov %s511_s16  ;;  %s665_s16 = smov %s573_s21 }
 0x2e2   : > { %s666_s17 = smov %s563_s18  ;;  %17 = sbr.rel (!%p15_p7) target bundleno = 6 (0x6), region = 72 }
 0x2e7   :  { %343 = vsyncpa [#allocation4], 1 }
 0x2e8   :  { %345 = vsyncpa [#allocation4 + $0x1], 1 }

</bundles_post_ra>
